<compile_context>
chip_gen: v7x
topology: tpu7x:2x2x1
jax: 0.10.0
libtpu: 0.0.40
codegen_flags: <defaults>
</compile_context>

<pallas_src>
import jax
import jax.numpy as jnp
from jax.experimental import pallas as pl
from jax.experimental.pallas import tpu as pltpu


def _round_up(v, m):
    return (v + m - 1) // m * m


def _pow2_floor(v):
    p = 1
    while p * 2 <= v:
        p *= 2
    return p


def _vmem_capacity_bytes():
    # Generation-aware VMEM sizing (v5e/v6e: 128 MiB, v7x: 64 MiB per TC).
    try:
        cap = getattr(pltpu.get_tpu_info(), "vmem_capacity_bytes", None)
        if cap:
            return int(cap)
    except Exception:
        pass
    return 128 << 20


def _silu(x):
    # Overflow-free, single-transcendental SiLU: x * sigmoid(x),
    # sigmoid(x) = 0.5 * (1 + tanh(x / 2))  ->  one EUP op per element.
    return x * (0.5 * (1.0 + jnp.tanh(0.5 * x)))


# ------------------------------- kernels -------------------------------------


def _sage_mlp_kernel(x_ref, w1_ref, w2_ref, rmsw_ref, wg_ref, h_ref):
    """lin1 -> SiLU -> lin2 -> LlamaRMSNorm -> (folded) GNN1 weight, per row tile.

    GNN1 is folded here because (adj @ h) @ W == adj @ (h @ W); removes one matmul,
    one bf16 cast and the w_gnn1 DMA from the propagate kernel K2.
    """
    f32 = jnp.float32
    h = jnp.dot(x_ref[...], w1_ref[...], preferred_element_type=f32)
    h = _silu(h)
    h = jnp.dot(h.astype(jnp.bfloat16), w2_ref[...], preferred_element_type=f32)
    var = jnp.mean(h * h, axis=-1, keepdims=True)
    h = h * jax.lax.rsqrt(var + 1e-6) * rmsw_ref[...]
    h = jnp.dot(h.astype(jnp.bfloat16), wg_ref[...], preferred_element_type=f32)
    h_ref[...] = h.astype(h_ref.dtype)


def _propagate_gnn1_kernel(adj_ref, h_ref, rdeg_ref, out_ref, acc_ref):
    """mean-propagate (int8 0/1 adjacency, column-tiled) -> SiLU (GNN1 pre-folded)."""
    k = pl.program_id(1)

    @pl.when(k == 0)
    def _():
        acc_ref[...] = jnp.zeros_like(acc_ref)

    a = adj_ref[...].astype(jnp.bfloat16)        # int8 -> bf16 upcast hides under DMA
    acc_ref[...] += jnp.dot(a, h_ref[...], preferred_element_type=jnp.float32)

    @pl.when(k == pl.num_programs(1) - 1)
    def _():
        p = acc_ref[...] * rdeg_ref[...]         # per-row 1/deg (PyG 'mean' aggregation)
        out_ref[...] = _silu(p).astype(out_ref.dtype)


def _propagate_fuse_head_kernel(adj_ref, h_ref, rdeg_ref, prompt_ref, wg1_ref,
                                wp1_ref, wfh_ref, b_ref, logits_ref, acc_ref):
    """mean-propagate -> folded FusionBlock (fuse1/fuse2) -> folded head -> logits."""
    k = pl.program_id(1)
    f32 = jnp.float32

    @pl.when(k == 0)
    def _():
        acc_ref[...] = jnp.zeros_like(acc_ref)

    a = adj_ref[...].astype(jnp.bfloat16)
    acc_ref[...] += jnp.dot(a, h_ref[...], preferred_element_type=f32)

    @pl.when(k == pl.num_programs(1) - 1)
    def _():
        gx = (acc_ref[...] * rdeg_ref[...]).astype(jnp.bfloat16)
        # fuse1(concat(g_lin(gx), prompt_lin(prompt))) with bias-free linears folded.
        f = jnp.dot(gx, wg1_ref[...], preferred_element_type=f32)
        f = f + jnp.dot(prompt_ref[...], wp1_ref[...], preferred_element_type=f32)
        f = _silu(f)
        # fuse2 + classification head folded into one matmul.
        z = jnp.dot(f.astype(jnp.bfloat16), wfh_ref[...], preferred_element_type=f32)
        logits_ref[...] = z + b_ref[...]


# ------------------------------- wrapper --------------------------------------


def linear_head_forward(x, edge_index, prompt, params):
    """Returns (log_softmax(logits, axis=1), logits), matching LinearHead.forward."""
    f32, bf16 = jnp.float32, jnp.bfloat16
    N, llm = x.shape
    hg = params['w_lin2'].shape[1]
    hf = params['w_g'].shape[1]
    fuse = params['w_fuse2'].shape[0]            # 10 * hf
    y = params['w_head'].shape[1]
    FPAD = _round_up(fuse, 128)                  # 320 -> 384
    YPAD = _round_up(y, 128)                     # 7   -> 128

    # ---- generation-aware tile sizing ----
    vmem_cap = _vmem_capacity_bytes()
    small_vmem = vmem_cap <= (80 << 20)          # v7x: 64 MiB per TC
    adj_budget = (20 << 20) if small_vmem else (56 << 20)
    vmem_limit = (44 << 20) if small_vmem else (96 << 20)
    tm_max = 512 if small_vmem else 1024

    n128 = _round_up(N, 128)
    TM = min(tm_max, _pow2_floor(n128))          # row tile (power of two, mult of 32)
    if n128 // TM < 2:                           # >= 2 row tiles so v7x megacore can
        TM = max(32, TM // 2)                    # shard the "parallel" axis on 2 TCs
    # adjacency column (contraction) tile: int8 double-buffered within adj_budget
    TK = max(128, min(_pow2_floor(max(1, adj_budget // (2 * TM))),
                      2048, _pow2_floor(n128)))
    N_pad = _round_up(N, max(TM, TK))            # TM, TK powers of two -> both divide
    grid_rows, grid_cols = N_pad // TM, N_pad // TK

    # ---- adjacency: exact 0/1 edge multiplicity (int8) + per-row 1/deg column ----
    # Built once directly at N_pad; degree from an O(E) scatter (no dense row-sum);
    # mean-normalization applied in-kernel after the matmul.
    # TODO(synk): for large sparse graphs replace this dense adjacency with an O(E)
    #             scalar-prefetch gather / segment-mean kernel.
    src = edge_index[0].astype(jnp.int32)
    dst = edge_index[1].astype(jnp.int32)
    ones_e = jnp.ones(src.shape, jnp.int32)
    # scatter-add in int32 (robust on TPU), store as int8 (edge multiplicity < 128)
    adj = jnp.zeros((N_pad, N_pad), jnp.int32).at[dst, src].add(ones_e).astype(jnp.int8)
    deg = jnp.zeros((N_pad,), f32).at[dst].add(1.0)
    rdeg = (1.0 / jnp.maximum(deg, 1.0)).reshape(N_pad, 1)

    x_p = jnp.pad(x.astype(f32), ((0, N_pad - N), (0, 0))).astype(bf16)
    prompt_p = jnp.pad(prompt.astype(f32), ((0, N_pad - N), (0, 0))).astype(bf16)

    # ---- fold back-to-back bias-free linears (wrapper side, f32), pad, cast bf16 ----
    w_g1 = params['w_g'].astype(f32) @ params['w_fuse1a'].astype(f32)        # (hf, fuse)
    w_p1 = params['w_prompt'].astype(f32) @ params['w_fuse1b'].astype(f32)   # (llm, fuse)
    w_f2h = params['w_fuse2'].astype(f32) @ params['w_head'].astype(f32)     # (fuse, y)
    w_g1 = jnp.pad(w_g1, ((0, 0), (0, FPAD - fuse))).astype(bf16)
    w_p1 = jnp.pad(w_p1, ((0, 0), (0, FPAD - fuse))).astype(bf16)
    w_f2h = jnp.pad(w_f2h, ((0, FPAD - fuse), (0, YPAD - y))).astype(bf16)
    b_pad = jnp.pad(params['b_head'].reshape(1, y).astype(f32),
                    ((0, 0), (0, YPAD - y)))     # padded lanes sliced off in wrapper

    w_lin1 = params['w_lin1'].astype(bf16)
    w_lin2 = params['w_lin2'].astype(bf16)
    w_gnn1 = params['w_gnn1'].astype(bf16)
    rms_w = params['rms_w'].reshape(1, hg).astype(f32)

    cp1 = pltpu.CompilerParams(dimension_semantics=("parallel",),
                               vmem_limit_bytes=vmem_limit)
    cp2 = pltpu.CompilerParams(dimension_semantics=("parallel", "arbitrary"),
                               vmem_limit_bytes=vmem_limit)

    row1 = lambda i: (i, 0)
    rep1 = lambda i: (0, 0)
    rowk = lambda i, k: (i, 0)
    repk = lambda i, k: (0, 0)
    adj_spec = pl.BlockSpec((TM, TK), lambda i, k: (i, k))
    hcol_spec = pl.BlockSpec((TK, hg), lambda i, k: (k, 0))
    rdeg_spec = pl.BlockSpec((TM, 1), rowk)

    def ce(flops, trans, byts):
        return pl.CostEstimate(flops=int(flops), transcendentals=int(trans),
                               bytes_accessed=int(byts))

    # ---- K1: per-row MLP (+ folded GNN1 weight): x -> h1' ----
    h1 = pl.pallas_call(
        _sage_mlp_kernel,
        out_shape=jax.ShapeDtypeStruct((N_pad, hg), bf16),
        grid=(grid_rows,),
        in_specs=[pl.BlockSpec((TM, llm), row1),
                  pl.BlockSpec((llm, 2 * hg), rep1),
                  pl.BlockSpec((2 * hg, hg), rep1),
                  pl.BlockSpec((1, hg), rep1),
                  pl.BlockSpec((hg, hg), rep1)],
        out_specs=pl.BlockSpec((TM, hg), row1),
        compiler_params=cp1,
        cost_estimate=ce(2 * N_pad * (llm * 2 * hg + 2 * hg * hg + hg * hg),
                         N_pad * 2 * hg,
                         2 * N_pad * (llm + hg)
                         + 2 * (llm * 2 * hg + 2 * hg * hg + hg * hg) + 4 * hg),
    )(x_p, w_lin1, w_lin2, rms_w, w_gnn1)

    # ---- K2: propagate #1 (column-tiled) + SiLU: (adj, h1') -> h2 ----
    h2 = pl.pallas_call(
        _propagate_gnn1_kernel,
        out_shape=jax.ShapeDtypeStruct((N_pad, hg), bf16),
        grid=(grid_rows, grid_cols),
        in_specs=[adj_spec, hcol_spec, rdeg_spec],
        out_specs=pl.BlockSpec((TM, hg), rowk),
        scratch_shapes=[pltpu.VMEM((TM, hg), jnp.float32)],
        compiler_params=cp2,
        cost_estimate=ce(2 * N_pad * N_pad * hg,
                         N_pad * hg,
                         N_pad * N_pad + 4 * N_pad * hg + 4 * N_pad),
    )(adj, h1, rdeg)

    # ---- K3: propagate #2 + folded FusionBlock + folded head -> logits ----
    logits_pad = pl.pallas_call(
        _propagate_fuse_head_kernel,
        out_shape=jax.ShapeDtypeStruct((N_pad, YPAD), f32),
        grid=(grid_rows, grid_cols),
        in_specs=[adj_spec, hcol_spec, rdeg_spec,
                  pl.BlockSpec((TM, llm), rowk),
                  pl.BlockSpec((hf, FPAD), repk),
                  pl.BlockSpec((llm, FPAD), repk),
                  pl.BlockSpec((FPAD, YPAD), repk),
                  pl.BlockSpec((1, YPAD), repk)],
        out_specs=pl.BlockSpec((TM, YPAD), rowk),
        scratch_shapes=[pltpu.VMEM((TM, hg), jnp.float32)],
        compiler_params=cp2,
        cost_estimate=ce(
            2 * N_pad * (N_pad * hg + hf * FPAD + llm * FPAD + FPAD * YPAD),
            N_pad * FPAD,
            N_pad * N_pad + 2 * N_pad * (hg + llm) + 4 * N_pad
            + 2 * (hf + llm) * FPAD + 2 * FPAD * YPAD + 4 * YPAD
            + 4 * N_pad * YPAD),
    )(adj, h2, rdeg, prompt_p, w_g1, w_p1, w_f2h, b_pad)

    logits = logits_pad[:N, :y]
    # log_softmax on the tiny (N, y) slice in plain XLA: negligible work and halves
    # K3's HBM output writes vs emitting both logp and logits from the kernel.
    return jax.nn.log_softmax(logits, axis=1), logits


if __name__ == "__main__":
    # Small shapes consistent with the module:
    #   N nodes, llm_shape features, hiddensize_gnn == hiddensize_fusion
    #   (required by FusionBlock.g_lin), y_shape classes, GNN_type='SAGE'.
    N, E = 8, 16
    llm = 32
    hg = hf = 32
    y = 7

    key = jax.random.PRNGKey(0)
    keys = jax.random.split(key, 16)

    def w(k, shape, scale=0.05):
        return jax.random.normal(k, shape, jnp.float32) * scale

    params = {
        # SAGEBlock (weights stored as (in_features, out_features) == torch W.T)
        'w_lin1': w(keys[0], (llm, 2 * hg)),      # lin1 (bias=False)
        'w_lin2': w(keys[1], (2 * hg, hg)),       # lin2 (bias=False)
        'rms_w': jnp.ones((1, hg), jnp.float32),  # LlamaRMSNorm weight (init = ones)
        'w_gnn1': w(keys[2], (hg, hg)),           # GNN1 (bias=False)
        # FusionBlock
        'w_prompt': w(keys[3], (llm, hf)),        # prompt_lin (bias=False)
        'w_g': w(keys[4], (hf, hf)),              # g_lin (bias=False)
        'w_fuse1a': w(keys[5], (hf, 10 * hf)),    # fuse1 half acting on g_lin output
        'w_fuse1b': w(keys[6], (hf, 10 * hf)),    # fuse1 half acting on prompt token
        'w_fuse2': w(keys[7], (10 * hf, hf)),     # fuse2 (bias=False)
    }

    # Head: Linear(hf, y) with bias; re-init exactly as written in LinearHead.__init__:
    #   W <- (W - W.mean() / W.std()) * 0.121   (verbatim operator precedence of the spec)
    w_head = w(keys[8], (hf, y), scale=1.0)
    w_head = (w_head - jnp.mean(w_head) / jnp.std(w_head)) * 0.121
    params['w_head'] = w_head
    params['b_head'] = w(keys[9], (1, y), scale=0.1)

    # Inputs
    x = jax.random.normal(keys[10], (N, llm), jnp.float32)
    prompt_embedding = jax.random.normal(keys[11], (N, llm), jnp.float32)
    src = jax.random.randint(keys[12], (E,), 0, N)
    dst = jax.random.randint(keys[13], (E,), 0, N)
    edge_index = jnp.stack([src, dst], axis=0)

    logp, logits = linear_head_forward(x, edge_index, prompt_embedding, params)
    jax.block_until_ready((logp, logits))

    assert logp.shape == (N, y) and logits.shape == (N, y)
    assert bool(jnp.all(jnp.isfinite(logp))) and bool(jnp.all(jnp.isfinite(logits)))
    print("KERNEL_OK")
</pallas_src>

<mosaic_0001>
module attributes {stable_mosaic.version = 11 : i64} {
  func.func @_sage_mlp_kernel(%arg0: i32, %arg1: memref<64x32xbf16, #tpu.memory_space<vmem>>, %arg2: memref<32x64xbf16, #tpu.memory_space<vmem>>, %arg3: memref<64x32xbf16, #tpu.memory_space<vmem>>, %arg4: memref<1x32xf32, #tpu.memory_space<vmem>>, %arg5: memref<32x32xbf16, #tpu.memory_space<vmem>>, %arg6: memref<64x32xbf16, #tpu.memory_space<vmem>>) attributes {dimension_semantics = [#tpu.dimension_semantics<parallel>], iteration_bounds = array<i64: 2>, scalar_prefetch = 0 : i64, scratch_operands = 0 : i64, tpu.core_type = #tpu.core_type<tc>, window_params = [{transform_indices = @transform_0, window_bounds = array<i64: 64, 32>}, {pipeline_mode = #tpu.pipeline_mode<synchronous>, transform_indices = @transform_1, window_bounds = array<i64: 32, 64>}, {pipeline_mode = #tpu.pipeline_mode<synchronous>, transform_indices = @transform_2, window_bounds = array<i64: 64, 32>}, {pipeline_mode = #tpu.pipeline_mode<synchronous>, transform_indices = @transform_3, window_bounds = array<i64: 1, 32>}, {pipeline_mode = #tpu.pipeline_mode<synchronous>, transform_indices = @transform_4, window_bounds = array<i64: 32, 32>}, {transform_indices = @transform_5, window_bounds = array<i64: 64, 32>}]} {
    %c0 = arith.constant 0 : index
    %c0_0 = arith.constant 0 : index
    %0 = vector.load %arg1[%c0, %c0_0] : memref<64x32xbf16, #tpu.memory_space<vmem>>, vector<64x32xbf16>
    %c0_1 = arith.constant 0 : index
    %c0_2 = arith.constant 0 : index
    %1 = vector.load %arg2[%c0_1, %c0_2] : memref<32x64xbf16, #tpu.memory_space<vmem>>, vector<32x64xbf16>
    %cst = arith.constant dense<0.000000e+00> : vector<64x64xf32>
    %2 = tpu.matmul %0, %1, %cst {dimension_numbers = #tpu.dot_dimension_numbers<[1], [0], [0], [1], [0, 0, 1, 1], [], []>} : vector<64x32xbf16>, vector<32x64xbf16>, vector<64x64xf32> -> vector<64x64xf32>
    %cst_3 = arith.constant 5.000000e-01 : f32
    %3 = vector.broadcast %cst_3 : f32 to vector<64x64xf32>
    %4 = arith.mulf %3, %2 : vector<64x64xf32>
    %5 = math.tanh %4 : vector<64x64xf32>
    %cst_4 = arith.constant 1.000000e+00 : f32
    %6 = vector.broadcast %cst_4 : f32 to vector<64x64xf32>
    %7 = arith.addf %6, %5 : vector<64x64xf32>
    %cst_5 = arith.constant 5.000000e-01 : f32
    %8 = vector.broadcast %cst_5 : f32 to vector<64x64xf32>
    %9 = arith.mulf %8, %7 : vector<64x64xf32>
    %10 = arith.mulf %2, %9 : vector<64x64xf32>
    %11 = arith.truncf %10 : vector<64x64xf32> to vector<64x64xbf16>
    %c0_6 = arith.constant 0 : index
    %c0_7 = arith.constant 0 : index
    %12 = vector.load %arg3[%c0_6, %c0_7] : memref<64x32xbf16, #tpu.memory_space<vmem>>, vector<64x32xbf16>
    %cst_8 = arith.constant dense<0.000000e+00> : vector<64x32xf32>
    %13 = tpu.matmul %11, %12, %cst_8 {dimension_numbers = #tpu.dot_dimension_numbers<[1], [0], [0], [1], [0, 0, 1, 1], [], []>} : vector<64x64xbf16>, vector<64x32xbf16>, vector<64x32xf32> -> vector<64x32xf32>
    %14 = arith.mulf %13, %13 : vector<64x32xf32>
    %cst_9 = arith.constant dense<0.000000e+00> : vector<64xf32>
    %15 = vector.multi_reduction <add>, %14, %cst_9 [1] : vector<64x32xf32> to vector<64xf32>
    %16 = vector.shape_cast %15 : vector<64xf32> to vector<64x1xf32>
    %cst_10 = arith.constant 3.200000e+01 : f32
    %17 = vector.broadcast %cst_10 : f32 to vector<64x1xf32>
    %18 = arith.divf %16, %17 : vector<64x1xf32>
    %cst_11 = arith.constant 9.99999997E-7 : f32
    %19 = vector.broadcast %cst_11 : f32 to vector<64x1xf32>
    %20 = arith.addf %18, %19 : vector<64x1xf32>
    %21 = math.rsqrt %20 : vector<64x1xf32>
    %22 = vector.broadcast %21 : vector<64x1xf32> to vector<64x32xf32>
    %23 = arith.mulf %13, %22 : vector<64x32xf32>
    %c0_12 = arith.constant 0 : index
    %c0_13 = arith.constant 0 : index
    %24 = vector.load %arg4[%c0_12, %c0_13] : memref<1x32xf32, #tpu.memory_space<vmem>>, vector<1x32xf32>
    %25 = vector.broadcast %24 : vector<1x32xf32> to vector<64x32xf32>
    %26 = arith.mulf %23, %25 : vector<64x32xf32>
    %27 = arith.truncf %26 : vector<64x32xf32> to vector<64x32xbf16>
    %c0_14 = arith.constant 0 : index
    %c0_15 = arith.constant 0 : index
    %28 = vector.load %arg5[%c0_14, %c0_15] : memref<32x32xbf16, #tpu.memory_space<vmem>>, vector<32x32xbf16>
    %cst_16 = arith.constant dense<0.000000e+00> : vector<64x32xf32>
    %29 = tpu.matmul %27, %28, %cst_16 {dimension_numbers = #tpu.dot_dimension_numbers<[1], [0], [0], [1], [0, 0, 1, 1], [], []>} : vector<64x32xbf16>, vector<32x32xbf16>, vector<64x32xf32> -> vector<64x32xf32>
    %30 = arith.truncf %29 : vector<64x32xf32> to vector<64x32xbf16>
    %c0_17 = arith.constant 0 : index
    %c0_18 = arith.constant 0 : index
    %31 = vector.load %arg6[%c0_17, %c0_18] : memref<64x32xbf16, #tpu.memory_space<vmem>>, vector<64x32xbf16>
    tpu.vector_store %arg6[%c0_17, %c0_18], %30 {strides = array<i32>} : memref<64x32xbf16, #tpu.memory_space<vmem>>, vector<64x32xbf16>,
    return
  }
  func.func @transform_0(%arg0: i32) -> (i32, i32) {
    %c0_i32 = arith.constant 0 : i32
    %c0_i32_0 = arith.constant 0 : i32
    return %arg0, %c0_i32 : i32, i32
  }
  func.func @transform_1(%arg0: i32) -> (i32, i32) {
    %c0_i32 = arith.constant 0 : i32
    %c0_i32_0 = arith.constant 0 : i32
    %c0_i32_1 = arith.constant 0 : i32
    return %c0_i32, %c0_i32_0 : i32, i32
  }
  func.func @transform_2(%arg0: i32) -> (i32, i32) {
    %c0_i32 = arith.constant 0 : i32
    %c0_i32_0 = arith.constant 0 : i32
    %c0_i32_1 = arith.constant 0 : i32
    return %c0_i32, %c0_i32_0 : i32, i32
  }
  func.func @transform_3(%arg0: i32) -> (i32, i32) {
    %c0_i32 = arith.constant 0 : i32
    %c0_i32_0 = arith.constant 0 : i32
    %c0_i32_1 = arith.constant 0 : i32
    return %c0_i32, %c0_i32_0 : i32, i32
  }
  func.func @transform_4(%arg0: i32) -> (i32, i32) {
    %c0_i32 = arith.constant 0 : i32
    %c0_i32_0 = arith.constant 0 : i32
    %c0_i32_1 = arith.constant 0 : i32
    return %c0_i32, %c0_i32_0 : i32, i32
  }
  func.func @transform_5(%arg0: i32) -> (i32, i32) {
    %c0_i32 = arith.constant 0 : i32
    %c0_i32_0 = arith.constant 0 : i32
    return %arg0, %c0_i32 : i32, i32
  }
}

</mosaic_0001>

<bundles_post_ra>
// kernel: tpu_custom_call.1
= control target key start
LH: loop header
LB: loop body
LE: loop exit
PB: predicated region body
PF: predicated region fallthrough
CT: control target
= control target key end

     0   :  { %10 = vsyncpa [#allocation3], 0  ;;  %s1801_s0 = inlined_call_operand.hbm [shape: bf16[128,32], index: 0, kind: input, shape index: {}]   ;;  %s1802_s1 = inlined_call_operand.hbm [shape: bf16[32,64], index: 1, kind: input, shape index: {}]   ;;  %s1803_s2 = inlined_call_operand.hbm [shape: bf16[64,32], index: 2, kind: input, shape index: {}]   ;;  %s1804_s3 = inlined_call_operand.hbm [shape: f32[1,32], index: 3, kind: input, shape index: {}]   ;;  %s1805_s4 = inlined_call_operand.hbm [shape: bf16[32,32], index: 4, kind: input, shape index: {}]   ;;  %s1806_s5 = inlined_call_operand.hbm [shape: bf16[128,32], index: 5, kind: output, shape index: {}]  }
   0x1   :  { %12 = vsyncpa [#allocation3 + $0x1], 0 }
   0x2   :  { %13 = vsyncpa [#allocation6], 0 }
   0x3   :  { %14 = vsyncpa [#allocation9], 0 }
   0x4   :  { %15 = vsyncpa [#allocation4], 0 }
   0x5   :  { %17 = vsyncpa [#allocation4 + $0x1], 0  ;;  %s1439_s18 = smov 0   ;;  %s1441_s19 = smov 0  }
   0x6   :  { %s1443_s20 = smov 0   ;;  %s1445_s21 = smov 0  }
   0x7 LB: > { %s1460_s22 = sadd.s32 4294967295, %s1397_s21   ;;  %s921_s23 = sadd.s32 4294967294, %s1397_s21   ;;  %s1397_s21 = sphi %s1445_s21, %s1829_s21   ;;  %s1393_s20 = sphi %s1443_s20, %s1828_s20   ;;  %s1389_s19 = sphi %s1441_s19, %s1827_s19   ;;  %s1385_s18 = sphi %s1439_s18, %s1826_s18  }
   0x8   : > { %p43_p0 = scmp.ne.s32.totalorder %s1389_s19, %s1385_s18  ;;  %p1807_p1 = scmp.eq.s32.totalorder %s1460_s22, 0 }
   0x9   : > { %p157_p3 = scmp.eq.s32.totalorder %s921_s23, 1  ;;  %p922_p5 = scmp.ge.s32.totalorder %s1397_s21, 1 }
   0xa   : > { %p1469_p4 = por %p1807_p1, %p43_p0  ;;  %p164_p7 = scmp.lt.s32.totalorder %s1397_s21, 3 }
   0xb   : > { %p1474_p6 = por %p157_p3, %p43_p0  ;;  %s1399_s27 = smov [#allocation5]  }
   0xc   : > { %s1810_s24 = scalar_select %p1469_p4, 1, 0 }
   0xd   : > { %s1811_s25 = scalar_select %p1474_p6, 1, 0 }
   0xe   : > { %p1479_p8 = pnand %p922_p5, %p164_p7  ;;  %s176_s28 = sshll.u32 %s1399_s27, 4  ;;  %s1483_s28 = int_to_ptr.vmem [resolvable:$true] %s176_s28 }
   0xf   : > { %s1400_s30 = smov [#allocation8]   ;;  %s1401_s7 = smov [#allocation7]  }
  0x10   : > { %s1812_s26 = scalar_select %p1479_p8, 1, 0 }
  0x11   : > { %p1066_p9 = pneg %p1479_p8  ;;  %s203_s6 = sshll.u32 %s1400_s30, 4  ;;  %s1494_s6 = int_to_ptr.vmem [resolvable:$true] %s203_s6 }
  0x12   : > { %s1496_s8 = sshll.u32 %s1401_s7, 4  ;;  %s1181_s11 = scalar_lea.hbm %s1802_s1, 256  ;;  %s190_s8 = int_to_ptr.vmem [resolvable:$true] %s1496_s8 }
  0x13   : > { %p1490_p11 = pnand %p1066_p9, %p1807_p1  ;;  %p1182_p12 = scmp.ne.s32.totalorder %s1802_s1, %s1181_s11 }
  0x14   : > { %p1188_p5 = scmp.lt.u32.totalorder %s1181_s11, %s1802_s1 }
  0x15   : > { %p1506_p13 = pneg %p1490_p11 }
  0x17   : > { %p1184_p0 = pnand %p1506_p13, %p1182_p12 }
  0x19   : > { %p1185_p3 = pneg %p1184_p0 }
  0x1b   : > { %p1190_p7 = pnand %p1188_p5, %p1185_p3 }
  0x1d   : > { %1193 = shalt.err (!%p1190_p7)
}
  0x1e   : > { %s1194_s17 = scalar_lea.vmem %s1483_s28, 256  ;;  %p1202_p2 = scmp.lt.s32.totalorder %s1483_s28, %s1483_s28 }
  0x1f   : > { %p1195_p9 = scmp.ne.s32.totalorder %s1483_s28, %s1194_s17  ;;  %p1203_p6 = scmp.lt.s32.totalorder %s1194_s17, %s1194_s17 }
  0x21   : > { %p1197_p10 = pnand %p1195_p9, %p1506_p13  ;;  %p1204_p12 = por %p1203_p6, %p1202_p2 }
  0x23   : > { %p1198_p1 = pneg %p1197_p10 }
  0x25   : > { %p1205_p0 = pnand %p1204_p12, %p1198_p1 }
  0x27   : > { %1208 = shalt.err (!%p1205_p0)
}
  0x28   : > { %s1402_s23 = smov 64   ;;  %s1403_s27 = smov 4  }
  0x29   : > { %1069 = dma.hbm_to_vmem [thread:$0]  (!%p1490_p11), %s1802_s1, 256, %s1483_s28, [#allocation6], %s1402_s23, %s1402_s23, %s1403_s27  }
  0x2a   : > { %s1209_s11 = scalar_lea.hbm %s1804_s3, 16 }
  0x2b   : > { %p1210_p1 = scmp.ne.s32.totalorder %s1804_s3, %s1209_s11  ;;  %p1216_p10 = scmp.lt.u32.totalorder %s1209_s11, %s1804_s3 }
  0x2d   : > { %p1212_p2 = pnand %p1210_p1, %p1506_p13 }
  0x2f   : > { %p1213_p6 = pneg %p1212_p2 }
  0x31   : > { %p1218_p3 = pnand %p1216_p10, %p1213_p6 }
  0x33   : > { %1221 = shalt.err (!%p1218_p3)
}
  0x34   : > { %s1222_s28 = scalar_lea.vmem %s1494_s6, 16  ;;  %s1229_s17 = scalar_lea.vmem %s1494_s6, 32 }
  0x35   : > { %p1223_p5 = scmp.ne.s32.totalorder %s1494_s6, %s1222_s28  ;;  %p1230_p12 = scmp.lt.s32.totalorder %s1494_s6, %s1494_s6 }
  0x36   : > { %p1231_p0 = scmp.lt.s32.totalorder %s1229_s17, %s1222_s28 }
  0x37   : > { %p1225_p7 = pnand %p1223_p5, %p1506_p13 }
  0x38   : > { %p1232_p1 = por %p1231_p0, %p1230_p12 }
  0x39   : > { %p1226_p9 = pneg %p1225_p7 }
  0x3b   : > { %p1233_p2 = pnand %p1232_p1, %p1226_p9 }
  0x3d   : > { %1236 = shalt.err (!%p1233_p2)
}
  0x3e   : > { %1075 = dma.hbm_to_vmem [thread:$0]  (!%p1490_p11), %s1804_s3, 16, %s1494_s6, [#allocation9]  }
  0x3f   : > { %s1237_s11 = scalar_lea.hbm %s1803_s2, 512 }
  0x40   : > { %p1238_p6 = scmp.ne.s32.totalorder %s1803_s2, %s1237_s11  ;;  %p1244_p5 = scmp.lt.u32.totalorder %s1237_s11, %s1803_s2 }
  0x42   : > { %p1240_p10 = pnand %p1238_p6, %p1506_p13 }
  0x44   : > { %p1241_p3 = pneg %p1240_p10 }
  0x46   : > { %p1246_p7 = pnand %p1244_p5, %p1241_p3 }
  0x48   : > { %1249 = shalt.err (!%p1246_p7)
}
  0x49   : > { %s1250_s28 = scalar_lea.vmem %s190_s8, 512  ;;  %p1258_p1 = scmp.lt.s32.totalorder %s190_s8, %s190_s8 }
  0x4a   : > { %p1251_p9 = scmp.ne.s32.totalorder %s190_s8, %s1250_s28  ;;  %p1259_p2 = scmp.lt.s32.totalorder %s1250_s28, %s1250_s28 }
  0x4c   : > { %p1253_p12 = pnand %p1251_p9, %p1506_p13  ;;  %p1260_p4 = por %p1259_p2, %p1258_p1 }
  0x4e   : > { %p1254_p0 = pneg %p1253_p12 }
  0x50   : > { %p1261_p8 = pnand %p1260_p4, %p1254_p0 }
  0x52   : > { %1264 = shalt.err (!%p1261_p8)
}
  0x53   : > { %1072 = dma.hbm_to_vmem [thread:$0]  (!%p1490_p11), %s1803_s2, 512, %s190_s8, [#allocation6], %s1402_s23, %s1402_s23, %s1403_s27  }
  0x54   : > { %s1404_s30 = smov [#allocation10]   ;;  %s1265_s11 = scalar_lea.hbm %s1805_s4, 256 }
  0x55   : > { %s213_s7 = sshll.u32 %s1404_s30, 4  ;;  %p1266_p4 = scmp.ne.s32.totalorder %s1805_s4, %s1265_s11  ;;  %s214_s7 = int_to_ptr.vmem [resolvable:$true] %s213_s7 }
  0x56   : > { %p1272_p10 = scmp.lt.u32.totalorder %s1265_s11, %s1805_s4 }
  0x57   : > { %p1268_p8 = pnand %p1266_p4, %p1506_p13 }
  0x59   : > { %p1269_p6 = pneg %p1268_p8 }
  0x5b   : > { %p1274_p3 = pnand %p1272_p10, %p1269_p6 }
  0x5d   : > { %1277 = shalt.err (!%p1274_p3)
}
  0x5e   : > { %s1278_s8 = scalar_lea.vmem %s214_s7, 256  ;;  %p1286_p12 = scmp.lt.s32.totalorder %s214_s7, %s214_s7 }
  0x5f   : > { %p1279_p5 = scmp.ne.s32.totalorder %s214_s7, %s1278_s8  ;;  %p1287_p0 = scmp.lt.s32.totalorder %s1278_s8, %s1278_s8 }
  0x61   : > { %p1281_p7 = pnand %p1279_p5, %p1506_p13  ;;  %p1288_p1 = por %p1287_p0, %p1286_p12 }
  0x63   : > { %p1282_p9 = pneg %p1281_p7 }
  0x65   : > { %p1289_p2 = pnand %p1288_p1, %p1282_p9 }
  0x67   : > { %1292 = shalt.err (!%p1289_p2)
}
  0x68   : > { %1078 = dma.hbm_to_vmem [thread:$0]  (!%p1490_p11), %s1805_s4, 256, %s214_s7, [#allocation9], %s1402_s23, %s1402_s23, %s1403_s27  }
  0x69   : > { %s1598_s14 = sadd.s32 1, %s1397_s21   ;;  %s30_s29 = sadd.s32 1, %s1393_s20 }
  0x6a   : > { %s27_s17 = ssub.s32 %s1397_s21, %s1598_s14  ;;  %p37_p13 = scmp.ne.s32.totalorder %s1393_s20, %s1389_s19 }
  0x6b   : > { %p28_p4 = scmp.eq.s32.totalorder %s27_s17, 0  ;;  %p38_p8 = scmp.eq.s32.totalorder %s1397_s21, 0 }
  0x6c   : > { %p1815_p6 = scmp.eq.s32.totalorder %s1460_s22, 1  ;;  %p1091_p3 = scmp.lt.s32.totalorder %s1397_s21, 2 }
  0x6d   : > { %s1614_s9 = scalar_select %p28_p4, %s1393_s20, %s30_s29  }
  0x6e   : > { %p1608_p10 = por %p1815_p6, %p37_p13  ;;  %p39_p5 = por %p38_p8, %p37_p13 }
  0x6f   : > { %s227_s10 = sand.u32 1, %s1393_s20   ;;  %s976_s7 = sshll.u32 %s1397_s21, 9 }
  0x70   : > { %s928_s11 = sshll.u32 %s227_s10, 5  ;;  %s1621_s15 = scalar_lea.hbm %s1801_s0, %s976_s7 }
  0x71   : > { %s231_s16 = scalar_lea.vmem [#allocation2], %s928_s11  ;;  %p1625_p11 = pnand %p1091_p3, %p39_p5 }
  0x72   : > { %s238_s8 = sshll.u32 %s231_s16, 4  ;;  %s1629_s6 = scalar_lea.sflag [#allocation3], %s227_s10  ;;  %s1623_s8 = int_to_ptr.vmem [resolvable:$true] %s238_s8 }
  0x73   : > { %s1293_s29 = scalar_lea.hbm %s1621_s15, 512  ;;  %p1295_p9 = pneg %p1625_p11 }
  0x74   : > { %p1294_p7 = scmp.ne.s32.totalorder %s1621_s15, %s1293_s29  ;;  %s1298_s7 = scalar_lea.hbm %s1801_s0, 1024 }
  0x75   : > { %p1299_p1 = scmp.lt.u32.totalorder %s1621_s15, %s1801_s0  ;;  %p1300_p2 = scmp.lt.u32.totalorder %s1298_s7, %s1293_s29 }
  0x76   : > { %p1296_p12 = pnand %p1295_p9, %p1294_p7  ;;  %p1302_p4 = scmp.lt.u32.totalorder %s1293_s29, %s1621_s15 }
  0x77   : > { %p1301_p13 = por %p1300_p2, %p1299_p1 }
  0x78   : > { %p1297_p0 = pneg %p1296_p12 }
  0x79   : > { %p1303_p8 = por %p1302_p4, %p1301_p13 }
  0x7b   : > { %p1304_p6 = pnand %p1303_p8, %p1297_p0 }
  0x7d   : > { %1307 = shalt.err (!%p1304_p6)
}
  0x7e   : > { %s1308_s10 = scalar_lea.vmem %s1623_s8, 512  ;;  %s1405_s16 = smov [#allocation2]  }
  0x7f   : > { %p1309_p3 = scmp.ne.s32.totalorder %s1623_s8, %s1308_s10  ;;  %s1313_s17 = sshll.u32 %s1405_s16, 4  ;;  %s1314_s17 = int_to_ptr.vmem [resolvable:$false] %s1313_s17 }
  0x80   : > { %s1315_s11 = scalar_lea.vmem %s1314_s17, 1024  ;;  %p1316_p12 = scmp.lt.s32.totalorder %s1623_s8, %s1314_s17 }
  0x81   : > { %p1311_p5 = pnand %p1309_p3, %p1295_p9  ;;  %p1317_p1 = scmp.lt.s32.totalorder %s1315_s11, %s1308_s10 }
  0x83   : > { %p1312_p7 = pneg %p1311_p5  ;;  %p1318_p2 = por %p1317_p1, %p1316_p12 }
  0x85   : > { %p1319_p13 = pnand %p1318_p2, %p1312_p7 }
  0x87   : > { %1322 = shalt.err (!%p1319_p13)
}
  0x88   : > { %1082 = dma.hbm_to_vmem [thread:$0]  (!%p1625_p11), %s1621_s15, 512, %s1623_s8, %s1629_s6, %s1402_s23, %s1402_s23, %s1403_s27  }
  0x89   : > { %p1818_p9 = scmp.ne.s32.totalorder %s1812_s26, 0 }
  0x8a   : > { %s1663_s29 = sand.u32 (!%p1818_p9), 1, %s1389_s19   ;;  %p1819_p0 = scmp.ne.s32.totalorder (!%p1818_p9), %s1810_s24, 0 }
  0x8b   : > { %250 = sbr.rel (%p1818_p9) target bundleno = 1025 (0x401), region = 40  ;;  %s932_s7 = sshll.u32 (!%p1818_p9), %s1663_s29, 5 }
  0x8c   : > { %s253_s12 = scalar_lea.sflag (!%p1818_p9), [#allocation3], %s1663_s29  ;;  %s256_s28 = scalar_lea.vmem (!%p1818_p9), [#allocation2], %s932_s7 }
  0x92   : > { %1368 = dma.done.wait (%p1819_p0), %s253_s12, 512  }
  0x93   : > { %1370 = vsyncadd (%p1819_p0), %s253_s12, 4294966784  ;;  %p1820_p11 = scmp.eq.s32.totalorder %s1460_s22, 0 }
  0x95   : > { %1372 = dma.done.wait (%p1820_p11), [#allocation6], 768   ;;  %p1821_p4 = pmov %p1820_p11 }
  0x97   : > { %1374 = vsyncadd (%p1821_p4), [#allocation6], 4294966528  ;;  %p1822_p8 = pmov %p1821_p4 }
  0x98   : > { %p1823_p6 = pmov %p1821_p4 }
  0x99   : > { %1376 = dma.done.wait (%p1822_p8), [#allocation9], 272  }
  0x9a   : > { %1378 = vsyncadd (%p1823_p6), [#allocation9], 4294967024  ;;  %v1137_v0 = vld [vmem:[#allocation5] sm:$0xff]   ;;  %v1138_v1 = vld [vmem:[#allocation5 + $0x8] sm:$0xff]   ;;  %vm346_vm0 = vcmask 261120   ;;  %vm500_vm1 = vcmask 523264  }
  0x9b   : > { %1006 = vmatprep.subr.bf16.mxu0 %v1137_v0  ;;  %v1139_v2 = vld [vmem:[%s256_s28] sm:$0xff]   ;;  %v1140_v3 = vld [vmem:[%s256_s28 + $0x8] sm:$0xff]   ;;  %v1141_v4 = vld [vmem:[%s256_s28 + $0x10] sm:$0xff]   ;;  %vm787_vm2 = vcmask 257024   ;;  %s298_s24 = scalar_lea.vmem [#allocation11], %s932_s7  ;;  %s985_s26 = sshll.u32 %s1460_s22, 9 }
  0x9c   : > { %1007 = vmatpush3.bf16.msra.mxu0 %v1137_v0  ;;  %1010 = vmatprep.mubr.msk.bf16.mxu0 %vm346_vm0, %v1139_v2  ;;  %v1142_v5 = vld [vmem:[%s256_s28 + $0x18] sm:$0xff]   ;;  %v1143_v6 = vld [vmem:[#allocation7] sm:$0xff]   ;;  %v1145_v8 = vld [vmem:[#allocation7 + $0x10] sm:$0xff]   ;;  %s810_s23 = sshll.u32 %s298_s24, 4  ;;  %s1752_s8 = scalar_lea.hbm %s1806_s5, %s985_s26  ;;  %s1754_s23 = int_to_ptr.vmem [resolvable:$true] %s810_s23 }
  0x9d   : > { %1008 = vmatprep.subr.bf16.mxu0 %v1138_v1  ;;  %1018 = vmatprep.subr.bf16.mxu1 %v1143_v6  ;;  %v1144_v7 = vld [vmem:[#allocation7 + $0x8] sm:$0xff]   ;;  %v1146_v9 = vld [vmem:[#allocation7 + $0x18] sm:$0xff]   ;;  %s797_s22 = scalar_lea.sflag [#allocation4], %s1663_s29  ;;  %s1323_s6 = scalar_lea.vmem %s1754_s23, 512 }
  0x9e   : > { %1019 = vmatpush3.bf16.msra.mxu1 %v1143_v6  ;;  %p1324_p3 = scmp.ne.s32.totalorder %s1754_s23, %s1323_s6  ;;  %s1406_s13 = smov [#allocation11]  }
  0x9f   : > { %1020 = vmatprep.subr.bf16.mxu1 %v1144_v7  ;;  %s1327_s10 = sshll.u32 %s1406_s13, 4  ;;  %s1328_s10 = int_to_ptr.vmem [resolvable:$false] %s1327_s10 }
  0xa0   : > { %1009 = vmatpush3.bf16.msra.mxu0 %v1138_v1  ;;  %p1325_p5 = pnand %p1324_p3, %p1608_p10  ;;  %s1329_s16 = scalar_lea.vmem %s1328_s10, 1024 }
  0xa1   : > { %p1330_p12 = scmp.lt.s32.totalorder %s1754_s23, %s1328_s10  ;;  %p1331_p1 = scmp.lt.s32.totalorder %s1329_s16, %s1323_s6 }
  0xa2   : > { %1021 = vmatpush3.bf16.msra.mxu1 %v1144_v7  ;;  %p1326_p7 = pneg %p1325_p5 }
  0xa3   : > { %1011 = vmatmul.mubr.msk.bf16.vlgmr.msra.gmra.mrb[0].mxu0 %vm346_vm0, %v1140_v3  ;;  %1022 = vmatprep.subr.bf16.mxu1 %v1145_v8  ;;  %p1332_p2 = por %p1331_p1, %p1330_p12 }
  0xa4   : > { %1014 = vmatprep.mubr.msk.bf16.mxu0 %vm346_vm0, %v1141_v4 }
  0xa5   : > { %p1333_p13 = pnand %p1332_p2, %p1326_p7 }
  0xa6   : > { %1023 = vmatpush3.bf16.msra.mxu1 %v1145_v8 }
  0xa7   : > { %1024 = vmatprep.subr.bf16.mxu1 %v1146_v9 }
  0xaa   : > { %1025 = vmatpush3.bf16.msra.mxu1 %v1146_v9 }
  0xab   : > { %1015 = vmatmul.mubr.msk.bf16.gmra.mrb[4].mxu0 %vm346_vm0, %v1142_v5 }
 0x176   : > { %v1012_v10 = vpop.f32.mrb[0].mxu0 }
 0x177   : > { %v426_v11 = vmul.f32 0.5, %v1012_v10  ;;  %v393_v12 = vpop.f32.mrb[1].mxu0 }
 0x178   : > { %v424_v13 = vmul.f32 0.5, %v393_v12  ;;  %v1013_v14 = vpop.f32.mrb[2].mxu0 }
 0x179   : > { %1149 = vtanh.f32 %v426_v11  ;;  %v427_v15 = vmul.f32 0.5, %v1013_v14  ;;  %v396_v16 = vpop.f32.mrb[3].mxu0 }
 0x17a   : > { %1151 = vtanh.f32 %v424_v13  ;;  %v425_v17 = vmul.f32 0.5, %v396_v16 }
 0x17b   : > { %1153 = vtanh.f32 %v427_v15 }
 0x17c   : > { %1155 = vtanh.f32 %v425_v17 }
 0x17e   : > { %v1016_v18 = vpop.f32.mrb[4].mxu0 }
 0x17f   : > { %v430_v19 = vmul.f32 0.5, %v1016_v18  ;;  %v409_v20 = vpop.f32.mrb[5].mxu0 }
 0x180   : > { %v428_v21 = vmul.f32 0.5, %v409_v20  ;;  %v1017_v22 = vpop.f32.mrb[6].mxu0 }
 0x181   : > { %1157 = vtanh.f32 %v430_v19  ;;  %v431_v23 = vmul.f32 0.5, %v1017_v22  ;;  %v412_v24 = vpop.f32.mrb[7].mxu0 }
 0x182   : > { %1159 = vtanh.f32 %v428_v21  ;;  %v429_v25 = vmul.f32 0.5, %v412_v24 }
 0x183   : > { %v1150_v26 = vpop.eup %1149  ;;  %1161 = vtanh.f32 %v431_v23  ;;  %v1148_v23 = vld [vmem:[#allocation10 + $0x8] sm:$0xff]  }
 0x184   : > { %v1152_v27 = vpop.eup %1151  ;;  %v442_v28 = vadd.f32 1.0, %v1150_v26  ;;  %1163 = vtanh.f32 %v429_v25 }
 0x185   : > { %v1154_v29 = vpop.eup %1153  ;;  %v440_v30 = vadd.f32 1.0, %v1152_v27 }
 0x186   : > { %v1156_v31 = vpop.eup %1155  ;;  %v450_v32 = vmul.f32 0.5, %v442_v28  ;;  %v443_v33 = vadd.f32 1.0, %v1154_v29 }
 0x187   : > { %v448_v34 = vmul.f32 0.5, %v440_v30  ;;  %v441_v35 = vadd.f32 1.0, %v1156_v31 }
 0x188   : > { %v451_v36 = vmul.f32 0.5, %v443_v33  ;;  %v458_v38 = vmul.f32 %v1012_v10, %v450_v32 }
 0x189   : > { %v449_v37 = vmul.f32 0.5, %v441_v35  ;;  %v456_v41 = vmul.f32 %v448_v34, %v393_v12 }
 0x18a   : > { %v459_v39 = vmul.f32 %v1013_v14, %v451_v36 }
 0x18b   : > { %v1158_v40 = vpop.eup %1157  ;;  %v457_v42 = vmul.f32 %v449_v37, %v396_v16 }
 0x18c   : > { %v1160_v43 = vpop.eup %1159  ;;  %v465_v44 = vpack.c.bf16 %v459_v39, %v458_v38  ;;  %v446_v45 = vadd.f32 1.0, %v1158_v40 }
 0x18d   : > { %v1162_v46 = vpop.eup %1161  ;;  %v444_v47 = vadd.f32 1.0, %v1160_v43  ;;  %v464_v48 = vpack.c.bf16 %v457_v42, %v456_v41 }
 0x18e   : > { %v1164_v49 = vpop.eup %1163  ;;  %v454_v50 = vmul.f32 0.5, %v446_v45  ;;  %v447_v51 = vadd.f32 1.0, %v1162_v46 }
 0x18f   : > { %v452_v52 = vmul.f32 0.5, %v444_v47  ;;  %v445_v53 = vadd.f32 1.0, %v1164_v49  ;;  %1026 = vmatprep.mubr.msk.bf16.mxu1 %vm500_vm1, %v464_v48 }
 0x190   : > { %v455_v54 = vmul.f32 0.5, %v447_v51  ;;  %1027 = vmatmul.mubr.msk.bf16.vlgmr.msra.gmra.mrb[0].mxu1 %vm500_vm1, %v465_v44  ;;  %v462_v56 = vmul.f32 %v1016_v18, %v454_v50 }
 0x191   : > { %v453_v55 = vmul.f32 0.5, %v445_v53  ;;  %v460_v58 = vmul.f32 %v452_v52, %v409_v20  ;;  %v956_v52 = vld [vmem:[#allocation8] ss:$0 sm:$0xff] }
 0x192   : > { %v463_v57 = vmul.f32 %v1017_v22, %v455_v54  ;;  %v1147_v22 = vld [vmem:[#allocation10] sm:$0xff]  }
 0x193   : > { %v461_v59 = vmul.f32 %v453_v55, %v412_v24  ;;  %1034 = vmatprep.subr.bf16.mxu0 %v1147_v22 }
 0x194   : > { %v467_v60 = vpack.c.bf16 %v463_v57, %v462_v56  ;;  %1035 = vmatpush3.bf16.msra.mxu0 %v1147_v22 }
 0x195   : > { %v466_v61 = vpack.c.bf16 %v461_v59, %v460_v58  ;;  %1036 = vmatprep.subr.bf16.mxu0 %v1148_v23 }
 0x197   : > { %1030 = vmatprep.mubr.msk.bf16.mxu1 %vm500_vm1, %v466_v61 }
 0x198   : > { %1031 = vmatmul.mubr.msk.bf16.gmra.mrb[4].mxu1 %vm500_vm1, %v467_v60  ;;  %1037 = vmatpush3.bf16.msra.mxu0 %v1148_v23 }
 0x263   : > { %v1689_v62 = vpop.f32.mrb[0].mxu1 }
 0x264   : > { %v1691_v63 = vpop.f32.mrb[1].mxu1  ;;  %v580_v0 = vmul.f32 %v1689_v62, %v1689_v62 }
 0x265   : > { %v1695_v1 = vpop.f32.mrb[2].mxu1  ;;  %v578_v2 = vmul.f32 %v1691_v63, %v1691_v63 }
 0x266   : > { %v581_v3 = vmul.f32 %v1695_v1, %v1695_v1  ;;  %v1701_v4 = vpop.f32.mrb[3].mxu1  ;;  %v592_v5 = vsel %vm346_vm0, %v580_v0, 0.0 }
 0x267   : > { %v579_v6 = vmul.f32 %v1701_v4, %v1701_v4  ;;  %593 = vadd.xlane.f32.xlu1 %v592_v5  ;;  %v586_v7 = vsel %vm346_vm0, %v578_v2, 0.0 }
 0x268   : > { %587 = vadd.xlane.f32.xlu0 %v586_v7  ;;  %v595_v8 = vsel %vm346_vm0, %v581_v3, 0.0 }
 0x269   : > { %v589_v10 = vsel %vm346_vm0, %v579_v6, 0.0 }
 0x26b   : > { %596 = vadd.xlane.f32.xlu1 %v595_v8  ;;  %v1708_v9 = vpop.f32.mrb[4].mxu1 }
 0x26c   : > { %590 = vadd.xlane.f32.xlu0 %v589_v10  ;;  %v1711_v11 = vpop.f32.mrb[5].mxu1  ;;  %v584_v15 = vmul.f32 %v1708_v9, %v1708_v9 }
 0x26d   : > { %v582_v12 = vmul.f32 %v1711_v11, %v1711_v11  ;;  %v1715_v13 = vpop.f32.mrb[6].mxu1 }
 0x26e   : > { %v1717_v14 = vpop.f32.mrb[7].mxu1  ;;  %v585_v18 = vmul.f32 %v1715_v13, %v1715_v13  ;;  %v604_v20 = vsel %vm346_vm0, %v584_v15, 0.0 }
 0x26f   : > { %v583_v16 = vmul.f32 %v1717_v14, %v1717_v14  ;;  %v598_v17 = vsel %vm346_vm0, %v582_v12, 0.0 }
 0x270   : > { %599 = vadd.xlane.f32.xlu0 %v598_v17  ;;  %v607_v21 = vsel %vm346_vm0, %v585_v18, 0.0 }
 0x271   : > { %v601_v19 = vsel %vm346_vm0, %v583_v16, 0.0 }
 0x272   : > { %602 = vadd.xlane.f32.xlu1 %v601_v19 }
 0x274   : > { %605 = vadd.xlane.f32.xlu0 %v604_v20 }
 0x276   : > { %608 = vadd.xlane.f32.xlu1 %v607_v21 }
 0x2f4   : > { %v594_v24 = vpop.xlane.xlu1 %593 }
 0x2f5   : > { %v613_v25 = vmul.f32 0.03125, %v594_v24  ;;  %v588_v26 = vpop.xlane.xlu0 %587 }
 0x2f6   : > { %v611_v27 = vmul.f32 0.03125, %v588_v26 }
 0x2f7   : > { %v621_v28 = vadd.f32 1e-06, %v613_v25 }
 0x2f8   : > { %v619_v29 = vadd.f32 1e-06, %v611_v27  ;;  %v597_v30 = vpop.xlane.xlu1 %596 }
 0x2f9   : > { %1165 = vrsqrt.f32 %v621_v28  ;;  %v614_v31 = vmul.f32 0.03125, %v597_v30  ;;  %v591_v32 = vpop.xlane.xlu0 %590 }
 0x2fa   : > { %1167 = vrsqrt.f32 %v619_v29  ;;  %v612_v33 = vmul.f32 0.03125, %v591_v32 }
 0x2fb   : > { %v622_v34 = vadd.f32 1e-06, %v614_v31 }
 0x2fc   : > { %v620_v35 = vadd.f32 1e-06, %v612_v33 }
 0x2fd   : > { %1169 = vrsqrt.f32 %v622_v34  ;;  %v600_v36 = vpop.xlane.xlu0 %599 }
 0x2fe   : > { %1171 = vrsqrt.f32 %v620_v35  ;;  %v615_v37 = vmul.f32 0.03125, %v600_v36 }
 0x2ff   : > { %v603_v38 = vpop.xlane.xlu1 %602 }
 0x300   : > { %v623_v39 = vadd.f32 1e-06, %v615_v37  ;;  %v616_v40 = vmul.f32 0.03125, %v603_v38 }
 0x301   : > { %v606_v41 = vpop.xlane.xlu0 %605 }
 0x302   : > { %1173 = vrsqrt.f32 %v623_v39  ;;  %v624_v42 = vadd.f32 1e-06, %v616_v40  ;;  %v617_v43 = vmul.f32 0.03125, %v606_v41 }
 0x303   : > { %v1166_v44 = vpop.eup %1165  ;;  %v609_v45 = vpop.xlane.xlu1 %608 }
 0x304   : > { %v1168_v46 = vpop.eup %1167  ;;  %1175 = vrsqrt.f32 %v624_v42  ;;  %v625_v47 = vadd.f32 1e-06, %v617_v43  ;;  %v618_v48 = vmul.f32 0.03125, %v609_v45  ;;  %v637_v49 = vmul.f32 %v1166_v44, %v1689_v62 }
 0x305   : > { %v635_v53 = vmul.f32 %v1168_v46, %v1691_v63 }
 0x306   : > { %1177 = vrsqrt.f32 %v625_v47  ;;  %v626_v50 = vadd.f32 1e-06, %v618_v48  ;;  %v652_v57 = vmul.f32 %v956_v52, %v637_v49 }
 0x307   : > { %v1170_v51 = vpop.eup %1169  ;;  %v650_v59 = vmul.f32 %v956_v52, %v635_v53 }
 0x308   : > { %v1172_v54 = vpop.eup %1171  ;;  %v638_v55 = vmul.f32 %v1170_v51, %v1695_v1  ;;  %1179 = vrsqrt.f32 %v626_v50 }
 0x309   : > { %v636_v56 = vmul.f32 %v1172_v54, %v1701_v4 }
 0x30a   : > { %v653_v58 = vmul.f32 %v956_v52, %v638_v55 }
 0x30b   : > { %v651_v60 = vmul.f32 %v956_v52, %v636_v56 }
 0x30c   : > { %v1174_v61 = vpop.eup %1173  ;;  %v659_v0 = vpack.c.bf16 %v653_v58, %v652_v57 }
 0x30d   : > { %v658_v2 = vpack.c.bf16 %v651_v60, %v650_v59  ;;  %v639_v62 = vmul.f32 %v1174_v61, %v1711_v11 }
 0x30e   : > { %v1176_v3 = vpop.eup %1175 }
 0x30f   : > { %1038 = vmatprep.mubr.msk.bf16.mxu0 %vm346_vm0, %v658_v2  ;;  %v640_v63 = vmul.f32 %v1176_v3, %v1717_v14  ;;  %v654_v1 = vmul.f32 %v956_v52, %v639_v62 }
 0x310   : > { %v1178_v5 = vpop.eup %1177  ;;  %1039 = vmatmul.mubr.msk.bf16.vlgmr.msra.gmra.mrb[8].mxu0 %vm346_vm0, %v659_v0 }
 0x311   : > { %v655_v6 = vmul.f32 %v956_v52, %v640_v63  ;;  %v641_v4 = vmul.f32 %v1178_v5, %v1708_v9 }
 0x312   : > { %v1180_v7 = vpop.eup %1179 }
 0x313   : > { %v660_v8 = vpack.c.bf16 %v655_v6, %v654_v1  ;;  %v642_v10 = vmul.f32 %v1180_v7, %v1715_v13  ;;  %v656_v11 = vmul.f32 %v956_v52, %v641_v4 }
 0x315   : > { %1042 = vmatprep.mubr.msk.bf16.mxu0 %vm346_vm0, %v660_v8  ;;  %v657_v12 = vmul.f32 %v956_v52, %v642_v10 }
 0x317   : > { %v661_v15 = vpack.c.bf16 %v657_v12, %v656_v11 }
 0x319   : > { %1043 = vmatmul.mubr.msk.bf16.gmra.mrb[12].mxu0 %vm346_vm0, %v661_v15 }
 0x3e3   : > { %v1040_v14 = vpop.f32.mrb[8].mxu0 }
 0x3e4   : > { %v979_v16 = vpack.c.bf16 %v1040_v14, %v1040_v14  ;;  %v724_v17 = vpop.f32.mrb[9].mxu0 }
 0x3e5   : > { %v977_v18 = vpack.c.bf16 %v724_v17, %v724_v17  ;;  %v1041_v19 = vpop.f32.mrb[10].mxu0 }
 0x3e6   : > { %790 = vst.msk [vmem:[%s298_s24 + $0x8] sm:$0xf] %vm787_vm2, %v979_v16  ;;  %v980_v9 = vpack.c.bf16 %v1041_v19, %v1041_v19  ;;  %v727_v13 = vpop.f32.mrb[11].mxu0 }
 0x3e7   : > { %788 = vst.msk [vmem:[%s298_s24] sm:$0xf] %vm787_vm2, %v977_v18  ;;  %v978_v20 = vpack.c.bf16 %v727_v13, %v727_v13 }
 0x3e8   : > { %791 = vst.msk [vmem:[%s298_s24 + $0xc] sm:$0xf] %vm787_vm2, %v980_v9 }
 0x3e9   : > { %789 = vst.msk [vmem:[%s298_s24 + $0x4] sm:$0xf] %vm787_vm2, %v978_v20 }
 0x3ec   : > { %v1044_v21 = vpop.f32.mrb[12].mxu0 }
 0x3ed   : > { %v983_v22 = vpack.c.bf16 %v1044_v21, %v1044_v21  ;;  %v740_v23 = vpop.f32.mrb[13].mxu0 }
 0x3ee   : > { %v981_v24 = vpack.c.bf16 %v740_v23, %v740_v23  ;;  %v1045_v25 = vpop.f32.mrb[14].mxu0 }
 0x3ef   : > { %794 = vst.msk [vmem:[%s298_s24 + $0x18] sm:$0xf] %vm787_vm2, %v983_v22  ;;  %v984_v26 = vpack.c.bf16 %v1045_v25, %v1045_v25  ;;  %v743_v27 = vpop.f32.mrb[15].mxu0 }
 0x3f0   : > { %792 = vst.msk [vmem:[%s298_s24 + $0x10] sm:$0xf] %vm787_vm2, %v981_v24  ;;  %v982_v28 = vpack.c.bf16 %v743_v27, %v743_v27 }
 0x3f1   : > { %795 = vst.msk [vmem:[%s298_s24 + $0x1c] sm:$0xf] %vm787_vm2, %v984_v26 }
 0x3f2   : > { %793 = vst.msk [vmem:[%s298_s24 + $0x14] sm:$0xf] %vm787_vm2, %v982_v28 }
 0x3f3   : > { %1336 = shalt.err (!%p1333_p13)
}
 0x3f4   : > { %s1337_s17 = scalar_lea.hbm %s1752_s8, 512  ;;  %s1341_s12 = scalar_lea.hbm %s1806_s5, 1024 }
 0x3f5   : > { %p1338_p9 = scmp.ne.s32.totalorder %s1752_s8, %s1337_s17  ;;  %p1342_p4 = scmp.lt.u32.totalorder %s1752_s8, %s1806_s5 }
 0x3f6   : > { %p1343_p8 = scmp.lt.u32.totalorder %s1341_s12, %s1337_s17  ;;  %p1345_p3 = scmp.lt.u32.totalorder %s1337_s17, %s1752_s8 }
 0x3f7   : > { %p1339_p0 = pnand %p1338_p9, %p1608_p10 }
 0x3f8   : > { %p1344_p6 = por %p1343_p8, %p1342_p4 }
 0x3f9   : > { %p1340_p11 = pneg %p1339_p0 }
 0x3fa   : > { %p1346_p5 = por %p1345_p3, %p1344_p6 }
 0x3fc   : > { %p1347_p7 = pnand %p1346_p5, %p1340_p11 }
 0x3fe   : > { %1350 = shalt.err (!%p1347_p7)
}
 0x3ff   : > { %s1407_s26 = smov 64   ;;  %s1408_s27 = smov 4  }
 0x400   : > { %1064 = dma.vmem_to_hbm [thread:$0]  (%p1608_p10), %s1754_s23, 512, %s1752_s8, %s797_s22, %s1407_s26, %s1407_s26, %s1408_s27  }
 0x401 PF: > { %s825_s15 = sand.u32 1, %s1385_s18   ;;  %p1824_p12 = scmp.ne.s32.totalorder %s1811_s25, 0 }
 0x402   : > { %p1825_p1 = scmp.ge.s32.totalorder %s1397_s21, 2  ;;  %s826_s6 = scalar_lea.sflag [#allocation4], %s825_s15 }
 0x404   : > { %p1084_p2 = pnand %p1825_p1, %p1824_p12 }
 0x406   : > { %1380 = dma.done.wait (!%p1084_p2), %s826_s6, 512  }
 0x407   : > { %1382 = vsyncadd (!%p1084_p2), %s826_s6, 4294966784  ;;  %p20_p13 = scmp.ge.s32.totalorder %s1598_s14, 4   ;;  %s1826_s18 = smov %s1389_s19 }
 0x408   : > { %s1827_s19 = smov %s1393_s20  ;;  %s1828_s20 = smov %s1614_s9 }
 0x409   : > { %s1829_s21 = smov %s1598_s14  ;;  %22 = sbr.rel (!%p20_p13) target bundleno = 7 (0x7), region = 101 }
 0x410   :  { %831 = vsyncpa [#allocation3], 1 }
 0x411   :  { %833 = vsyncpa [#allocation3 + $0x1], 1 }
 0x412   :  { %834 = vsyncpa [#allocation6], 1 }
 0x413   :  { %835 = vsyncpa [#allocation9], 1 }
 0x414   :  { %836 = vsyncpa [#allocation4], 1 }
 0x415   :  { %838 = vsyncpa [#allocation4 + $0x1], 1 }

</bundles_post_ra>
